<compile_context>
chip_gen: v7x
topology: tpu7x:2x2x1
jax: 0.10.0
libtpu: 0.0.40
codegen_flags: <defaults>
</compile_context>

<pallas_src>
import functools

import jax
import jax.numpy as jnp
from jax import lax
from jax.experimental import pallas as pl
from jax.experimental.pallas import tpu as pltpu


def _memory_kernel(q_ref, k_ref, upd_ref, e_ref, sm_ref, rowsum_ref, ploss_ref):
    t = pl.program_id(1)

    q = q_ref[...]                       # (D, T): features on sublanes, pixels on lanes
    keys = k_ref[...]                    # (M, D)
    D = q.shape[0]
    M = keys.shape[0]
    T = q.shape[1]

    # ---- F.normalize(query, dim=channel); torch eps = 1e-12 on the norm ----
    sq_norm = jnp.sum(q * q, axis=0, keepdims=True)                # (1, T)
    inv_norm = lax.rsqrt(jnp.maximum(sq_norm, 1e-24))              # (1, T)  (EUP)
    qn = q * inv_norm                                              # (D, T)

    # ---- score = keys @ qn (contract over D, no transpose) -> (M, T) ----
    score = lax.dot_general(keys, qn, (((1,), (0,)), ((), ())),
                            preferred_element_type=jnp.float32)

    # ---- shared exp for BOTH softmaxes ----
    # A single constant shift (max key norm >= any score since ||qn|| <= 1) keeps
    # exp() bounded; both softmaxes are invariant to a constant shift, so this is
    # mathematically identical to the max-stabilized softmax.
    knsq = jnp.sum(keys * keys, axis=1, keepdims=True)             # (M, 1)
    shift = jnp.sqrt(jnp.max(knsq, axis=0, keepdims=True))         # (1, 1)
    e = jnp.exp(score - shift)                                     # (M, T)
    e_ref[...] = e                                                 # sq numerator

    # per-memory-slot partial sums over pixels, accumulated across the tile axis
    @pl.when(t == 0)
    def _init():
        rowsum_ref[...] = jnp.zeros_like(rowsum_ref)
    rowsum_ref[...] += jnp.sum(e, axis=1, keepdims=True)           # (M, 1)

    # ---- softmax over memory slots (per pixel, fully local) ----
    colsum = jnp.sum(e, axis=0, keepdims=True)                     # (1, T)
    sm = e * pl.reciprocal(colsum, approx=True)                    # (M, T)
    sm_ref[...] = sm

    # ---- read(): updated_query = [qn ; keys^T @ sm] -- direct stores, no concat temp ----
    concat = lax.dot_general(keys, sm, (((0,), (0,)), ((), ())),
                             preferred_element_type=jnp.float32)   # (D, T)
    upd_ref[0:D, :] = qn
    upd_ref[D:2 * D, :] = concat

    # ---- gather_loss(): per-pixel ||qn - keys[argmax_m score]||^2 (closed form) ----
    col_max = jnp.max(score, axis=0, keepdims=True)                # (1, T)
    miota = lax.broadcasted_iota(jnp.int32, (M, T), 0)
    first_idx = jnp.min(jnp.where(score >= col_max, miota, M),
                        axis=0, keepdims=True)                     # (1, T) first-max (topk tie-break)
    knsq_at = jnp.sum(jnp.where(miota == first_idx, knsq, 0.0),
                      axis=0, keepdims=True)                       # (1, T)
    qnsq = sq_norm * inv_norm * inv_norm                           # ||qn||^2, (1, T)
    ploss_ref[...] = qnsq + knsq_at - 2.0 * col_max                # per-pixel SSE


def _pick_tile(hw, cap=1024):
    """Largest multiple-of-128 divisor of hw that is <= cap, else the full extent.

    cap=1024 keeps the double-buffered q/updated_query tiles + temporaries well under
    the v7x 64 MiB VMEM (and the explicit scoped limit below) even for D=512.
    """
    cands = [t for t in range(128, min(hw, cap) + 1, 128) if hw % t == 0]
    return max(cands) if cands else hw


@functools.partial(jax.jit, static_argnames=("train",))
def memory_forward(query_nchw, keys, train=False):
    """Mirrors Memory.forward.

    train=False: returns (updated_query, updated_memory, softmax_score_query,
                          softmax_score_memory, gathering_loss)
    train=True : returns updated_query only (matching the original module's return).
    """
    B, C, H, W = query_nchw.shape
    M, D = keys.shape
    assert C == D, "feature_dim of query must equal key_dim of memory"
    HW = H * W
    N = B * HW

    T = _pick_tile(HW)
    assert HW % T == 0
    nt = HW // T

    # NCHW -> (B, C, H*W): pure reshape, pixels land on the lane axis (no transpose).
    q3 = query_nchw.reshape(B, C, HW).astype(jnp.float32)
    keys_f = keys.astype(jnp.float32)

    out_shapes = (
        jax.ShapeDtypeStruct((B, 2 * C, HW), jnp.float32),  # updated_query, channels-first
        jax.ShapeDtypeStruct((B, M, HW), jnp.float32),      # exp(score - shift) (sq numerator)
        jax.ShapeDtypeStruct((B, M, HW), jnp.float32),      # softmax_score_memory (M-major)
        jax.ShapeDtypeStruct((B, M, 1), jnp.float32),       # per-batch per-slot exp sums
        jax.ShapeDtypeStruct((B, 1, HW), jnp.float32),      # per-pixel gathering SSE
    )

    grid_spec = pltpu.PrefetchScalarGridSpec(
        num_scalar_prefetch=0,
        grid=(B, nt),
        in_specs=[
            pl.BlockSpec((None, C, T), lambda b, t: (b, 0, t)),   # query tile
            pl.BlockSpec((M, D), lambda b, t: (0, 0)),            # keys: tiny, resident
        ],
        out_specs=(
            pl.BlockSpec((None, 2 * C, T), lambda b, t: (b, 0, t)),
            pl.BlockSpec((None, M, T), lambda b, t: (b, 0, t)),
            pl.BlockSpec((None, M, T), lambda b, t: (b, 0, t)),
            pl.BlockSpec((None, M, 1), lambda b, t: (b, 0, 0)),   # accumulator over t
            pl.BlockSpec((None, 1, T), lambda b, t: (b, 0, t)),
        ),
    )

    upd3, e3, sm3, rowsum, ploss = pl.pallas_call(
        _memory_kernel,
        out_shape=out_shapes,
        grid_spec=grid_spec,
        compiler_params=pltpu.CompilerParams(
            dimension_semantics=("parallel", "arbitrary"),
            vmem_limit_bytes=48 * 1024 * 1024,
        ),
    )(q3, keys_f)

    # (B, 2C, H*W) -> (B, 2C, H, W): pure reshape (already channels-first, NCHW order).
    updated_query = upd3.reshape(B, 2 * C, H, W)

    if train:
        # TODO(synk): train-mode memory update (get_update_query scatter) and spread
        # loss are computed-and-discarded by the original forward; not implemented.
        return updated_query

    # Finish softmax over the N axis with the global per-slot sums; the division is
    # fused into the small (N, M)-layout transpose required by the module's API.
    total = jnp.sum(rowsum, axis=0)[None, :, :]                    # (1, M, 1)
    softmax_score_query = (e3 / total).transpose(0, 2, 1).reshape(N, M)
    softmax_score_memory = sm3.transpose(0, 2, 1).reshape(N, M)
    gathering_loss = jnp.sum(ploss) / (N * D)

    return updated_query, keys_f, softmax_score_query, softmax_score_memory, gathering_loss


def _reference(query_nchw, keys):
    """Pure-JAX reference of the test-mode forward for a sanity check."""
    B, C, H, W = query_nchw.shape
    M, D = keys.shape
    N = B * H * W
    q = jnp.transpose(query_nchw, (0, 2, 3, 1)).reshape(N, D)
    qn = q / jnp.maximum(jnp.linalg.norm(q, axis=-1, keepdims=True), 1e-12)
    score = qn @ keys.T
    sq = jax.nn.softmax(score, axis=0)
    sm = jax.nn.softmax(score, axis=1)
    upd = jnp.concatenate([qn, sm @ keys], axis=-1)
    updated_query = upd.reshape(B, H, W, 2 * D).transpose(0, 3, 1, 2)
    idx = jnp.argmax(score, axis=1)
    loss = jnp.mean((qn - keys[idx]) ** 2)
    return updated_query, keys, sq, sm, loss


if __name__ == "__main__":
    # small shapes consistent with the module: memory_size=16, feature_dim=key_dim=32
    B, C, H, W = 2, 32, 8, 8
    M = 16

    rng = jax.random.PRNGKey(0)
    k1, k2 = jax.random.split(rng)
    query = jax.random.normal(k1, (B, C, H, W), dtype=jnp.float32)
    keys = jax.random.normal(k2, (M, C), dtype=jnp.float32)
    keys = keys / jnp.linalg.norm(keys, axis=-1, keepdims=True)   # normalized memory items

    outs = memory_forward(query, keys, train=False)
    outs = jax.block_until_ready(outs)
    upd, mem, sq, sm, loss = outs

    r_upd, r_mem, r_sq, r_sm, r_loss = _reference(query, keys)
    assert upd.shape == (B, 2 * C, H, W)
    assert jnp.allclose(upd, r_upd, atol=2e-2, rtol=2e-2)
    assert jnp.allclose(sq, r_sq, atol=2e-2, rtol=2e-2)
    assert jnp.allclose(sm, r_sm, atol=2e-2, rtol=2e-2)
    assert jnp.allclose(loss, r_loss, atol=2e-2, rtol=2e-2)

    print("KERNEL_OK")
</pallas_src>

<mosaic_0001>
module attributes {stable_mosaic.version = 11 : i64} {
  func.func @_memory_kernel(%arg0: i32, %arg1: i32, %arg2: memref<1x32x64xf32, #tpu.memory_space<vmem>>, %arg3: memref<16x32xf32, #tpu.memory_space<vmem>>, %arg4: memref<1x64x64xf32, #tpu.memory_space<vmem>>, %arg5: memref<1x16x64xf32, #tpu.memory_space<vmem>>, %arg6: memref<1x16x64xf32, #tpu.memory_space<vmem>>, %arg7: memref<1x16x1xf32, #tpu.memory_space<vmem>>, %arg8: memref<1x1x64xf32, #tpu.memory_space<vmem>>) attributes {dimension_semantics = [#tpu.dimension_semantics<parallel>, #tpu.dimension_semantics<arbitrary>], iteration_bounds = array<i64: 2, 1>, scalar_prefetch = 0 : i64, scratch_operands = 0 : i64, tpu.core_type = #tpu.core_type<tc>, window_params = [{transform_indices = @transform_0, window_bounds = array<i64: 1, 32, 64>}, {pipeline_mode = #tpu.pipeline_mode<synchronous>, transform_indices = @transform_1, window_bounds = array<i64: 16, 32>}, {transform_indices = @transform_2, window_bounds = array<i64: 1, 64, 64>}, {transform_indices = @transform_3, window_bounds = array<i64: 1, 16, 64>}, {transform_indices = @transform_4, window_bounds = array<i64: 1, 16, 64>}, {transform_indices = @transform_5, window_bounds = array<i64: 1, 16, 1>}, {transform_indices = @transform_6, window_bounds = array<i64: 1, 1, 64>}]} {
    %c0 = arith.constant 0 : index
    %c0_0 = arith.constant 0 : index
    %c0_1 = arith.constant 0 : index
    %0 = vector.load %arg2[%c0, %c0_0, %c0_1] : memref<1x32x64xf32, #tpu.memory_space<vmem>>, vector<1x32x64xf32>
    %1 = vector.shape_cast %0 : vector<1x32x64xf32> to vector<32x64xf32>
    %c0_2 = arith.constant 0 : index
    %c0_3 = arith.constant 0 : index
    %2 = vector.load %arg3[%c0_2, %c0_3] : memref<16x32xf32, #tpu.memory_space<vmem>>, vector<16x32xf32>
    %3 = arith.mulf %1, %1 : vector<32x64xf32>
    %cst = arith.constant dense<0.000000e+00> : vector<64xf32>
    %4 = vector.multi_reduction <add>, %3, %cst [0] : vector<32x64xf32> to vector<64xf32>
    %5 = vector.shape_cast %4 : vector<64xf32> to vector<1x64xf32>
    %cst_4 = arith.constant 1.000000e-24 : f32
    %6 = vector.broadcast %cst_4 : f32 to vector<1x64xf32>
    %7 = arith.maximumf %5, %6 : vector<1x64xf32>
    %8 = math.rsqrt %7 : vector<1x64xf32>
    %9 = vector.broadcast %8 : vector<1x64xf32> to vector<32x64xf32>
    %10 = arith.mulf %1, %9 : vector<32x64xf32>
    %cst_5 = arith.constant dense<0.000000e+00> : vector<16x64xf32>
    %11 = tpu.matmul %2, %10, %cst_5 {dimension_numbers = #tpu.dot_dimension_numbers<[1], [0], [0], [1], [0, 0, 1, 1], [], []>} : vector<16x32xf32>, vector<32x64xf32>, vector<16x64xf32> -> vector<16x64xf32>
    %12 = arith.mulf %2, %2 : vector<16x32xf32>
    %cst_6 = arith.constant dense<0.000000e+00> : vector<16xf32>
    %13 = vector.multi_reduction <add>, %12, %cst_6 [1] : vector<16x32xf32> to vector<16xf32>
    %14 = vector.shape_cast %13 : vector<16xf32> to vector<16x1xf32>
    %cst_7 = arith.constant dense<0xFF800000> : vector<1xf32>
    %15 = vector.multi_reduction <maximumf>, %14, %cst_7 [0] : vector<16x1xf32> to vector<1xf32>
    %16 = vector.shape_cast %15 : vector<1xf32> to vector<1x1xf32>
    %17 = math.sqrt %16 : vector<1x1xf32>
    %18 = vector.broadcast %17 : vector<1x1xf32> to vector<16x64xf32>
    %19 = arith.subf %11, %18 : vector<16x64xf32>
    %20 = math.exp %19 : vector<16x64xf32>
    %c0_8 = arith.constant 0 : index
    %c0_9 = arith.constant 0 : index
    %c0_10 = arith.constant 0 : index
    %21 = vector.load %arg5[%c0_8, %c0_9, %c0_10] : memref<1x16x64xf32, #tpu.memory_space<vmem>>, vector<1x16x64xf32>
    %22 = vector.shape_cast %21 : vector<1x16x64xf32> to vector<16x64xf32>
    %23 = vector.shape_cast %20 : vector<16x64xf32> to vector<1x16x64xf32>
    tpu.vector_store %arg5[%c0_8, %c0_9, %c0_10], %23 {strides = array<i32>} : memref<1x16x64xf32, #tpu.memory_space<vmem>>, vector<1x16x64xf32>,
    %c0_i32 = arith.constant 0 : i32
    %24 = arith.cmpi eq, %arg1, %c0_i32 : i32
    %25 = arith.extui %24 : i1 to i32
    %c0_i32_11 = arith.constant 0 : i32
    %26 = arith.cmpi ne, %25, %c0_i32_11 : i32
    scf.if %26 {
      %cst_37 = arith.constant 0.000000e+00 : f32
      %76 = vector.broadcast %cst_37 : f32 to vector<16x1xf32>
      %c0_38 = arith.constant 0 : index
      %c0_39 = arith.constant 0 : index
      %c0_40 = arith.constant 0 : index
      %77 = vector.load %arg7[%c0_38, %c0_39, %c0_40] : memref<1x16x1xf32, #tpu.memory_space<vmem>>, vector<1x16x1xf32>
      %78 = vector.shape_cast %77 : vector<1x16x1xf32> to vector<16x1xf32>
      %79 = vector.shape_cast %76 : vector<16x1xf32> to vector<1x16x1xf32>
      tpu.vector_store %arg7[%c0_38, %c0_39, %c0_40], %79 {strides = array<i32>} : memref<1x16x1xf32, #tpu.memory_space<vmem>>, vector<1x16x1xf32>,
    } else {
    }
    %c0_12 = arith.constant 0 : index
    %c0_13 = arith.constant 0 : index
    %c0_14 = arith.constant 0 : index
    %27 = vector.load %arg7[%c0_12, %c0_13, %c0_14] : memref<1x16x1xf32, #tpu.memory_space<vmem>>, vector<1x16x1xf32>
    %28 = vector.shape_cast %27 : vector<1x16x1xf32> to vector<16x1xf32>
    %cst_15 = arith.constant dense<0.000000e+00> : vector<16xf32>
    %29 = vector.multi_reduction <add>, %20, %cst_15 [1] : vector<16x64xf32> to vector<16xf32>
    %30 = vector.shape_cast %29 : vector<16xf32> to vector<16x1xf32>
    %31 = arith.addf %28, %30 : vector<16x1xf32>
    %c0_16 = arith.constant 0 : index
    %c0_17 = arith.constant 0 : index
    %c0_18 = arith.constant 0 : index
    %32 = vector.load %arg7[%c0_16, %c0_17, %c0_18] : memref<1x16x1xf32, #tpu.memory_space<vmem>>, vector<1x16x1xf32>
    %33 = vector.shape_cast %32 : vector<1x16x1xf32> to vector<16x1xf32>
    %34 = vector.shape_cast %31 : vector<16x1xf32> to vector<1x16x1xf32>
    tpu.vector_store %arg7[%c0_16, %c0_17, %c0_18], %34 {strides = array<i32>} : memref<1x16x1xf32, #tpu.memory_space<vmem>>, vector<1x16x1xf32>,
    %cst_19 = arith.constant dense<0.000000e+00> : vector<64xf32>
    %35 = vector.multi_reduction <add>, %20, %cst_19 [0] : vector<16x64xf32> to vector<64xf32>
    %36 = vector.shape_cast %35 : vector<64xf32> to vector<1x64xf32>
    %37 = tpu.reciprocal %36 {approx = true} : vector<1x64xf32> -> vector<1x64xf32>
    %38 = vector.broadcast %37 : vector<1x64xf32> to vector<16x64xf32>
    %39 = arith.mulf %20, %38 : vector<16x64xf32>
    %c0_20 = arith.constant 0 : index
    %c0_21 = arith.constant 0 : index
    %c0_22 = arith.constant 0 : index
    %40 = vector.load %arg6[%c0_20, %c0_21, %c0_22] : memref<1x16x64xf32, #tpu.memory_space<vmem>>, vector<1x16x64xf32>
    %41 = vector.shape_cast %40 : vector<1x16x64xf32> to vector<16x64xf32>
    %42 = vector.shape_cast %39 : vector<16x64xf32> to vector<1x16x64xf32>
    tpu.vector_store %arg6[%c0_20, %c0_21, %c0_22], %42 {strides = array<i32>} : memref<1x16x64xf32, #tpu.memory_space<vmem>>, vector<1x16x64xf32>,
    %cst_23 = arith.constant dense<0.000000e+00> : vector<32x64xf32>
    %43 = tpu.matmul %2, %39, %cst_23 {dimension_numbers = #tpu.dot_dimension_numbers<[0], [0], [1], [1], [0, 1, 1, 1], [], []>} : vector<16x32xf32>, vector<16x64xf32>, vector<32x64xf32> -> vector<32x64xf32>
    %c0_24 = arith.constant 0 : index
    %c0_25 = arith.constant 0 : index
    %c0_26 = arith.constant 0 : index
    %44 = vector.load %arg4[%c0_24, %c0_25, %c0_26] : memref<1x64x64xf32, #tpu.memory_space<vmem>>, vector<1x32x64xf32>
    %45 = vector.shape_cast %44 : vector<1x32x64xf32> to vector<32x64xf32>
    %46 = vector.shape_cast %10 : vector<32x64xf32> to vector<1x32x64xf32>
    tpu.vector_store %arg4[%c0_24, %c0_25, %c0_26], %46 {strides = array<i32>} : memref<1x64x64xf32, #tpu.memory_space<vmem>>, vector<1x32x64xf32>,
    %c0_27 = arith.constant 0 : index
    %c32 = arith.constant 32 : index
    %c0_28 = arith.constant 0 : index
    %47 = vector.load %arg4[%c0_27, %c32, %c0_28] : memref<1x64x64xf32, #tpu.memory_space<vmem>>, vector<1x32x64xf32>
    %48 = vector.shape_cast %47 : vector<1x32x64xf32> to vector<32x64xf32>
    %49 = vector.shape_cast %43 : vector<32x64xf32> to vector<1x32x64xf32>
    tpu.vector_store %arg4[%c0_27, %c32, %c0_28], %49 {strides = array<i32>} : memref<1x64x64xf32, #tpu.memory_space<vmem>>, vector<1x32x64xf32>,
    %cst_29 = arith.constant dense<0xFF800000> : vector<64xf32>
    %50 = vector.multi_reduction <maximumf>, %11, %cst_29 [0] : vector<16x64xf32> to vector<64xf32>
    %51 = vector.shape_cast %50 : vector<64xf32> to vector<1x64xf32>
    %52 = tpu.iota {dimensions = array<i32: 0>} : vector<16x64xi32>
    %53 = vector.broadcast %51 : vector<1x64xf32> to vector<16x64xf32>
    %54 = arith.cmpf oge, %11, %53 : vector<16x64xf32>
    %c16_i32 = arith.constant 16 : i32
    %55 = vector.broadcast %c16_i32 : i32 to vector<16x64xi32>
    %56 = arith.select %54, %52, %55 : vector<16x64xi1>, vector<16x64xi32>
    %cst_30 = arith.constant dense<2147483647> : vector<64xi32>
    %57 = vector.multi_reduction <minsi>, %56, %cst_30 [0] : vector<16x64xi32> to vector<64xi32>
    %58 = vector.shape_cast %57 : vector<64xi32> to vector<1x64xi32>
    %59 = vector.broadcast %58 : vector<1x64xi32> to vector<16x64xi32>
    %60 = arith.cmpi eq, %52, %59 : vector<16x64xi32>
    %cst_31 = arith.constant 0.000000e+00 : f32
    %61 = vector.shape_cast %14 : vector<16x1xf32> to vector<16x1xf32>
    %62 = vector.broadcast %61 : vector<16x1xf32> to vector<16x64xf32>
    %63 = vector.broadcast %cst_31 : f32 to vector<16x64xf32>
    %64 = arith.select %60, %62, %63 : vector<16x64xi1>, vector<16x64xf32>
    %cst_32 = arith.constant dense<0.000000e+00> : vector<64xf32>
    %65 = vector.multi_reduction <add>, %64, %cst_32 [0] : vector<16x64xf32> to vector<64xf32>
    %66 = vector.shape_cast %65 : vector<64xf32> to vector<1x64xf32>
    %67 = arith.mulf %5, %8 : vector<1x64xf32>
    %68 = arith.mulf %67, %8 : vector<1x64xf32>
    %69 = arith.addf %68, %66 : vector<1x64xf32>
    %cst_33 = arith.constant 2.000000e+00 : f32
    %70 = vector.broadcast %cst_33 : f32 to vector<1x64xf32>
    %71 = arith.mulf %70, %51 : vector<1x64xf32>
    %72 = arith.subf %69, %71 : vector<1x64xf32>
    %c0_34 = arith.constant 0 : index
    %c0_35 = arith.constant 0 : index
    %c0_36 = arith.constant 0 : index
    %73 = vector.load %arg8[%c0_34, %c0_35, %c0_36] : memref<1x1x64xf32, #tpu.memory_space<vmem>>, vector<1x1x64xf32>
    %74 = vector.shape_cast %73 : vector<1x1x64xf32> to vector<1x64xf32>
    %75 = vector.shape_cast %72 : vector<1x64xf32> to vector<1x1x64xf32>
    tpu.vector_store %arg8[%c0_34, %c0_35, %c0_36], %75 {strides = array<i32>} : memref<1x1x64xf32, #tpu.memory_space<vmem>>, vector<1x1x64xf32>,
    return
  }
  func.func @transform_0(%arg0: i32, %arg1: i32) -> (i32, i32, i32) {
    %c0_i32 = arith.constant 0 : i32
    %c0_i32_0 = arith.constant 0 : i32
    return %arg0, %c0_i32, %arg1 : i32, i32, i32
  }
  func.func @transform_1(%arg0: i32, %arg1: i32) -> (i32, i32) {
    %c0_i32 = arith.constant 0 : i32
    %c0_i32_0 = arith.constant 0 : i32
    %c0_i32_1 = arith.constant 0 : i32
    return %c0_i32, %c0_i32_0 : i32, i32
  }
  func.func @transform_2(%arg0: i32, %arg1: i32) -> (i32, i32, i32) {
    %c0_i32 = arith.constant 0 : i32
    %c0_i32_0 = arith.constant 0 : i32
    return %arg0, %c0_i32, %arg1 : i32, i32, i32
  }
  func.func @transform_3(%arg0: i32, %arg1: i32) -> (i32, i32, i32) {
    %c0_i32 = arith.constant 0 : i32
    %c0_i32_0 = arith.constant 0 : i32
    return %arg0, %c0_i32, %arg1 : i32, i32, i32
  }
  func.func @transform_4(%arg0: i32, %arg1: i32) -> (i32, i32, i32) {
    %c0_i32 = arith.constant 0 : i32
    %c0_i32_0 = arith.constant 0 : i32
    return %arg0, %c0_i32, %arg1 : i32, i32, i32
  }
  func.func @transform_5(%arg0: i32, %arg1: i32) -> (i32, i32, i32) {
    %c0_i32 = arith.constant 0 : i32
    %c0_i32_0 = arith.constant 0 : i32
    %c0_i32_1 = arith.constant 0 : i32
    return %arg0, %c0_i32, %c0_i32_0 : i32, i32, i32
  }
  func.func @transform_6(%arg0: i32, %arg1: i32) -> (i32, i32, i32) {
    %c0_i32 = arith.constant 0 : i32
    %c0_i32_0 = arith.constant 0 : i32
    return %arg0, %c0_i32, %arg1 : i32, i32, i32
  }
}

</mosaic_0001>

<bundles_post_ra>
// kernel: memory_forward.1
= control target key start
LH: loop header
LB: loop body
LE: loop exit
PB: predicated region body
PF: predicated region fallthrough
CT: control target
= control target key end

     0   :  { %s1126_s21 = smov 0   ;;  %s1128_s22 = smov 0   ;;  %s1262_s0 = inlined_call_operand.vmem [shape: f32[2,32,64], index: 0, kind: input, shape index: {}]   ;;  %s1263_s1 = inlined_call_operand.vmem [shape: f32[16,32], index: 1, kind: input, shape index: {}]   ;;  %s1264_s2 = inlined_call_operand.vmem [shape: f32[2,64,64], index: 2, kind: output, shape index: {0}]   ;;  %s1265_s3 = inlined_call_operand.vmem [shape: f32[2,16,64], index: 3, kind: output, shape index: {1}]   ;;  %s1266_s4 = inlined_call_operand.vmem [shape: f32[2,16,64], index: 4, kind: output, shape index: {2}]   ;;  %s1267_s5 = inlined_call_operand.vmem [shape: f32[2,16,1], index: 5, kind: output, shape index: {3}]   ;;  %s1268_s6 = inlined_call_operand.vmem [shape: f32[2,1,64], index: 6, kind: output, shape index: {4}]  }
   0x1   :  { %s1130_s23 = smov 0  }
   0x2 LB: > { %s29_s24 = sadd.s32 1, %s1084_s22  ;;  %p962_p0 = scmp.ge.s32.totalorder %s1088_s23, 1  ;;  %s1088_s23 = sphi %s1130_s23, %s17_s23   ;;  %s1084_s22 = sphi %s1128_s22, %s1270_s22   ;;  %s1080_s21 = sphi %s1126_s21, %s1269_s21  }
   0x3   : > { %p31_p1 = scmp.ge.s32.totalorder %s29_s24, 2  ;;  %p246_p2 = scmp.lt.s32.totalorder %s1088_s23, 3 }
   0x5   : > { %s1272_s24 = smov (%p31_p1, %s29_s24), 0  ;;  %p247_p3 = pnand %p962_p0, %p246_p2 }
   0x6   : > { %p309_p4 = scmp.lt.s32.totalorder (!%p247_p3), %s1080_s21, 1  ;;  %v356_v0 = vld [vmem:[%s1263_s1] sm:$0xff] (!%p247_p3)  ;;  %vm382_vm0 = vcmask (!%p247_p3), 261120   ;;  %v357_v1 = vld [vmem:[%s1263_s1 + $0x8] sm:$0xff] (!%p247_p3)  ;;  %vm362_vm1 = vcmask (!%p247_p3), 523264   ;;  %vm558_vm2 = vcmask (!%p247_p3), 130048   ;;  %v673_v61 = vlaneseq (!%p247_p3) }
   0x7   : > { %250 = sbr.rel (%p247_p3) target bundleno = 544 (0x220), region = 28  ;;  %1006 = vmatprep.mubr.msk.f32.mxu0 (!%p247_p3), %vm382_vm0, %v356_v0  ;;  %v464_v2 = vmul.f32 (!%p247_p3), %v356_v0, %v356_v0  ;;  %v465_v3 = vmul.f32 (!%p247_p3), %v357_v1, %v357_v1  ;;  %526 = vxpose.xlu1.b32.start [1/2] (short) (narrow) (!%p247_p3), %v356_v0, 32  ;;  %vm498_vm3 = vcmask (!%p247_p3), 7168   ;;  %v1090_v36 = vmov (!%p247_p3), 0.0  }
   0x8   : > { %v674_v0 = vshrl.u32 (!%p247_p3), %v673_v61, 7  ;;  %vm711_vm14 = vcmask (!%p247_p3), 516096  }
   0x9   : > { %v466_v4 = vsel (!%p247_p3), %vm382_vm0, %v464_v2, 0.0  ;;  %v469_v5 = vsel (!%p247_p3), %vm382_vm0, %v465_v3, 0.0 }
   0xa   : > { %467 = vadd.xlane.f32.xlu0 (!%p247_p3), %v466_v4  ;;  %v675_v3 = vadd.s32 (!%p247_p3), 8, %v674_v0 }
   0xb   : > { %527 = vxpose.xlu1.b32.end [2/2] (short) (narrow) (!%p247_p3), %v357_v1, 32 }
   0xe   : > { %s1274_s21 = smov (!%p309_p4, %s1080_s21), 1  ;;  %470 = vadd.xlane.f32.xlu0 %v469_v5 }
   0xf   : > { %s981_s29 = sshll.u32 %s1274_s21, 5  ;;  %s982_s9 = sshll.u32 %s1274_s21, 6 }
  0x10   : > { %s316_s8 = scalar_lea.vmem %s1262_s0, %s981_s29  ;;  %s1176_s12 = scalar_lea.vmem %s1264_s2, %s982_s9 }
  0x11   : > { %v352_v6 = vld [vmem:[%s316_s8] sm:$0xff]  ;;  %v353_v7 = vld [vmem:[%s316_s8 + $0x8] sm:$0xff]  ;;  %v354_v8 = vld [vmem:[%s316_s8 + $0x10] sm:$0xff]  ;;  %s1189_s13 = sshll.u32 %s1274_s21, 4  ;;  %s351_s29 = scalar_lea.vmem %s1268_s6, %s1274_s21 }
  0x12   : > { %v355_v9 = vld [vmem:[%s316_s8 + $0x18] sm:$0xff]  ;;  %v358_v10 = vmul.f32 %v352_v6, %v352_v6  ;;  %v359_v11 = vmul.f32 %v353_v7, %v353_v7  ;;  %v360_v12 = vmul.f32 %v354_v8, %v354_v8  ;;  %s1195_s16 = scalar_lea.vmem %s1267_s5, %s1189_s13  ;;  %s332_s19 = scalar_lea.vmem %s1265_s3, %s1189_s13 }
  0x13   : > { %v361_v13 = vmul.f32 %v355_v9, %v355_v9  ;;  %500 = vst.msk [vmem:[%s1195_s16 + $0x8] sm:$0xff] %vm498_vm3, %v1090_v36  ;;  %499 = vst.msk [vmem:[%s1195_s16] sm:$0xff] %vm498_vm3, %v1090_v36  ;;  %s340_s26 = scalar_lea.vmem %s1266_s4, %s1189_s13 }
  0x14   : > { %v363_v14 = vsel %vm362_vm1, %v358_v10, 0.0  ;;  %v364_v15 = vsel %vm362_vm1, %v359_v11, 0.0  ;;  %v366_v16 = vsel %vm362_vm1, %v360_v12, 0.0 }
  0x15   : > { %v365_v17 = vadd.f32 %v364_v15, %v363_v14  ;;  %v368_v18 = vsel %vm362_vm1, %v361_v13, 0.0 }
  0x17   : > { %v367_v19 = vadd.f32 %v366_v16, %v365_v17 }
  0x19   : > { %v369_v20 = vadd.f32 %v368_v18, %v367_v19 }
  0x1b   : > { %v370_v21 = vrot.slane %v369_v20, 4 }
  0x1d   : > { %v371_v22 = vadd.f32 %v370_v21, %v369_v20 }
  0x1f   : > { %v372_v23 = vrot.slane %v371_v22, 2 }
  0x21   : > { %v373_v24 = vadd.f32 %v372_v23, %v371_v22 }
  0x23   : > { %v374_v25 = vrot.slane %v373_v24, 1 }
  0x25   : > { %v1163_v26 = vadd.f32 %v374_v25, %v373_v24 }
  0x27   : > { %v376_v27 = vmax.f32 %v1163_v26, 1e-24 }
  0x29   : > { %1056 = vrsqrt.f32 %v376_v27 }
  0x33   : > { %v1167_v28 = vpop.eup %1056 }
  0x34   : > { %v378_v29 = vmul.f32 %v1167_v28, %v352_v6  ;;  %v379_v30 = vmul.f32 %v1167_v28, %v353_v7  ;;  %v380_v31 = vmul.f32 %v1167_v28, %v354_v8  ;;  %v381_v32 = vmul.f32 %v1167_v28, %v355_v9 }
  0x36   : > { %v1019_v33 = vpack.c.bf16 %v379_v30, %v378_v29  ;;  %656 = vst.msk [vmem:[%s1176_s12] sm:$0xff] %vm362_vm1, %v378_v29  ;;  %657 = vst.msk [vmem:[%s1176_s12 + $0x8] sm:$0xff] %vm362_vm1, %v379_v30  ;;  %v1023_v34 = vpack.c.bf16 %v381_v32, %v380_v31 }
  0x37   : > { %658 = vst.msk [vmem:[%s1176_s12 + $0x10] sm:$0xff] %vm362_vm1, %v380_v31  ;;  %659 = vst.msk [vmem:[%s1176_s12 + $0x18] sm:$0xff] %vm362_vm1, %v381_v32 }
  0x38   : > { %1020 = vmatprep.subr.bf16.mxu0 %v1019_v33 }
  0x39   : > { %1022 = vmatpush3.bf16.msra.mxu0 %v1019_v33 }
  0x3a   : > { %1024 = vmatprep.subr.bf16.mxu0 %v1023_v34 }
  0x3d   : > { %1026 = vmatpush3.bf16.msra.mxu0 %v1023_v34 }
  0x40   : > { %1007 = vmatmul.mubr.msk.f32.vlgmr.msra.gmra.mrb[0].mxu0 %vm382_vm0, %v357_v1 }
  0x87   : > { %v542_v35 = vpop.trf.xlu1 }
  0x88   : > { %1013 = vmatprep.mubr.msk.f32.mxu1 %vm558_vm2, %v542_v35 }
  0x8b   : > { %v543_v35 = vpop.trf.xlu1 }
  0x97   : > { %v1201_v37 = vpop.xlane.xlu0 %467 }
  0x9b   : > { %v1203_v38 = vpop.xlane.xlu0 %470 }
  0x9c   : > { %v472_v39 = vmax.f32 %v1201_v37, %v1203_v38 }
  0x9e   : > { %v473_v40 = vrot.slane %v472_v39, 4 }
  0xa0   : > { %v474_v41 = vmax.f32 %v472_v39, %v473_v40 }
  0xa2   : > { %v475_v42 = vrot.slane %v474_v41, 2 }
  0xa4   : > { %v476_v43 = vmax.f32 %v474_v41, %v475_v42  ;;  %v706_v41 = vmul.f32 %v1167_v28, %v1163_v26 }
  0xa6   : > { %v477_v44 = vrot.slane %v476_v43, 1 }
  0xa8   : > { %v478_v45 = vmax.f32 %v476_v43, %v477_v44  ;;  %v544_v44 = vpop.trf.xlu1 }
  0xaa   : > { %1058 = vrsqrt.f32 %v478_v45  ;;  %vm481_vm4 = vcmp.eq.f32.partialorder %v478_v45, inf  ;;  %v484_v48 = vand.u32 2147483648, %v478_v45  ;;  %vm483_vm5 = vcmp.eq.f32.partialorder %v478_v45, 0.0 }
  0xb4   : > { %v1059_v46 = vpop.eup %1058 }
  0xb5   : > { %v480_v47 = vmul.f32 %v1059_v46, %v478_v45  ;;  %v707_v46 = vmul.f32 %v1167_v28, %v706_v41 }
  0xb7   : > { %v482_v49 = vsel %vm481_vm4, %v478_v45, %v480_v47 }
  0xb8   : > { %v485_v51 = vsel %vm483_vm5, %v484_v48, %v482_v49  ;;  %v545_v49 = vpop.trf.xlu1 }
 0x113   : > { %v1008_v50 = vpop.f32.mrb[0].mxu0 }
 0x114   : > { %v665_v52 = vsel %vm362_vm1, %v1008_v50, -inf  ;;  %v455_v53 = vpop.f32.mrb[1].mxu0  ;;  %v487_v54 = vsub.f32 %v1008_v50, %v485_v51 }
 0x115   : > { %v486_v55 = vsub.f32 %v455_v53, %v485_v51  ;;  %v664_v56 = vsel %vm362_vm1, %v455_v53, -inf  ;;  %v501_v51 = vld [vmem:[%s1195_s16] sm:$0xff] }
 0x116   : > { %v490_v57 = vmul.f32 1.442695, %v487_v54  ;;  %v666_v58 = vmax.f32 %v664_v56, %v665_v52 }
 0x117   : > { %v488_v59 = vmul.f32 1.442695, %v486_v55 }
 0x118   : > { %1060 = vpow2.f32 %v490_v57  ;;  %v667_v60 = vrot.slane %v666_v58, 4 }
 0x119   : > { %1062 = vpow2.f32 %v488_v59 }
 0x11a   : > { %v668_v62 = vmax.f32 %v666_v58, %v667_v60 }
 0x11c   : > { %v669_v63 = vrot.slane %v668_v62, 2 }
 0x11e   : > { %v670_v1 = vmax.f32 %v668_v62, %v669_v63 }
 0x120   : > { %v671_v2 = vrot.slane %v670_v1, 1 }
 0x122   : > { %v1061_v4 = vpop.eup %1060  ;;  %v672_v5 = vmax.f32 %v670_v1, %v671_v2 }
 0x123   : > { %v1063_v6 = vpop.eup %1062  ;;  %v506_v7 = vsel %vm362_vm1, %v1061_v4, 0.0  ;;  %493 = vst.msk [vmem:[%s332_s19 + $0x8] sm:$0xff] %vm362_vm1, %v1061_v4 }
 0x124   : > { %vm676_vm6 = vcmp.ge.f32.partialorder %v455_v53, %v672_v5  ;;  %vm677_vm7 = vcmp.ge.f32.partialorder %v1008_v50, %v672_v5  ;;  %507 = vadd.xlane.f32.xlu1 %v506_v7  ;;  %v503_v8 = vsel %vm362_vm1, %v1063_v6, 0.0  ;;  %492 = vst.msk [vmem:[%s332_s19] sm:$0xff] %vm362_vm1, %v1063_v6  ;;  %v709_v26 = vmul.f32 2.0, %v672_v5  ;;  %v502_v50 = vld [vmem:[%s1195_s16 + $0x8] sm:$0xff] }
 0x125   : > { %v678_v9 = vsel %vm676_vm6, %v674_v0, 16  ;;  %v679_v10 = vsel %vm677_vm7, %v675_v3, 16  ;;  %504 = vadd.xlane.f32.xlu0 %v503_v8  ;;  %v514_v11 = vadd.f32 %v506_v7, %v503_v8 }
 0x126   : > { %v680_v12 = vsel %vm362_vm1, %v678_v9, 2147483647  ;;  %v681_v13 = vsel %vm362_vm1, %v679_v10, 2147483647 }
 0x127   : > { %vm682_vm8 = vcmp.lt.s32.totalorder %v680_v12, %v681_v13  ;;  %v515_v14 = vrot.slane %v514_v11, 4 }
 0x128   : > { %v683_v15 = vsel %vm682_vm8, %v680_v12, %v681_v13 }
 0x129   : > { %v684_v16 = vrot.slane %v683_v15, 4  ;;  %v516_v17 = vadd.f32 %v515_v14, %v514_v11 }
 0x12b   : > { %vm685_vm9 = vcmp.lt.s32.totalorder %v683_v15, %v684_v16  ;;  %v517_v18 = vrot.slane %v516_v17, 2 }
 0x12c   : > { %v686_v19 = vsel %vm685_vm9, %v683_v15, %v684_v16 }
 0x12d   : > { %v687_v20 = vrot.slane %v686_v19, 2  ;;  %v518_v21 = vadd.f32 %v517_v18, %v516_v17 }
 0x12f   : > { %vm688_vm10 = vcmp.lt.s32.totalorder %v686_v19, %v687_v20  ;;  %v519_v22 = vrot.slane %v518_v21, 1 }
 0x130   : > { %v689_v23 = vsel %vm688_vm10, %v686_v19, %v687_v20 }
 0x131   : > { %v690_v24 = vrot.slane %v689_v23, 1  ;;  %v520_v25 = vadd.f32 %v519_v22, %v518_v21 }
 0x133   : > { %vm691_vm11 = vcmp.lt.s32.totalorder %v689_v23, %v690_v24  ;;  %1064 = vrcp.f32 %v520_v25 }
 0x134   : > { %v692_v27 = vsel %vm691_vm11, %v689_v23, %v690_v24 }
 0x135   : > { %vm693_vm12 = vcmp.eq.s32.totalorder %v674_v0, %v692_v27  ;;  %vm694_vm13 = vcmp.eq.s32.totalorder %v675_v3, %v692_v27 }
 0x136   : > { %v695_v29 = vsel %vm693_vm12, %v1201_v37, 0.0  ;;  %v696_v30 = vsel %vm694_vm13, %v1203_v38, 0.0 }
 0x137   : > { %v697_v31 = vsel %vm362_vm1, %v695_v29, 0.0  ;;  %v698_v32 = vsel %vm362_vm1, %v696_v30, 0.0 }
 0x138   : > { %v699_v33 = vadd.f32 %v698_v32, %v697_v31 }
 0x13a   : > { %v700_v34 = vrot.slane %v699_v33, 4 }
 0x13c   : > { %v701_v36 = vadd.f32 %v700_v34, %v699_v33 }
 0x13d   : > { %v1065_v39 = vpop.eup %1064 }
 0x13e   : > { %v702_v40 = vrot.slane %v701_v36, 2  ;;  %v522_v37 = vmul.f32 %v1065_v39, %v1063_v6  ;;  %v523_v38 = vmul.f32 %v1065_v39, %v1061_v4 }
 0x140   : > { %v703_v42 = vadd.f32 %v702_v40, %v701_v36  ;;  %524 = vst.msk [vmem:[%s340_s26] sm:$0xff] %vm362_vm1, %v522_v37  ;;  %525 = vst.msk [vmem:[%s340_s26 + $0x8] sm:$0xff] %vm362_vm1, %v523_v38  ;;  %v1027_v43 = vpack.c.bf16 %v523_v38, %v522_v37 }
 0x142   : > { %v704_v45 = vrot.slane %v703_v42, 1  ;;  %1028 = vmatprep.subr.bf16.mxu1 %v1027_v43 }
 0x143   : > { %1030 = vmatpush3.bf16.msra.mxu1 %v1027_v43 }
 0x144   : > { %v705_v47 = vadd.f32 %v704_v45, %v703_v42 }
 0x146   : > { %v708_v48 = vadd.f32 %v707_v46, %v705_v47  ;;  %1014 = vmatmul.mubr.msk.f32.vlgmr.msra.gmra.mrb[0].mxu1 %vm558_vm2, %v543_v35 }
 0x147   : > { %1016 = vmatprep.mubr.msk.f32.mxu1 %vm558_vm2, %v544_v44 }
 0x148   : > { %v710_v28 = vsub.f32 %v708_v48, %v709_v26 }
 0x14a   : > { %712 = vst.msk [vmem:[%s351_s29] sm:$0x1] %vm711_vm14, %v710_v28  ;;  %1017 = vmatmul.mubr.msk.f32.gmra.mrb[2].mxu1 %vm558_vm2, %v545_v49 }
 0x1b1   : > { %v508_v52 = vpop.xlane.xlu1 %507 }
 0x1b2   : > { %v510_v53 = vadd.f32 %v508_v52, %v502_v50  ;;  %v505_v54 = vpop.xlane.xlu0 %504 }
 0x1b3   : > { %v509_v55 = vadd.f32 %v505_v54, %v501_v51 }
 0x1b4   : > { %513 = vst.msk [vmem:[%s1195_s16 + $0x8] sm:$0xff] %vm498_vm3, %v510_v53 }
 0x1b5   : > { %512 = vst.msk [vmem:[%s1195_s16] sm:$0xff] %vm498_vm3, %v509_v55 }
 0x219   : > { %v1015_v56 = vpop.f32.mrb[0].mxu1 }
 0x21a   : > { %661 = vst.msk [vmem:[%s1176_s12 + $0x28] sm:$0xff] %vm362_vm1, %v1015_v56  ;;  %v637_v57 = vpop.f32.mrb[1].mxu1 }
 0x21b   : > { %660 = vst.msk [vmem:[%s1176_s12 + $0x20] sm:$0xff] %vm362_vm1, %v637_v57 }
 0x21d   : > { %v1018_v58 = vpop.f32.mrb[2].mxu1 }
 0x21e   : > { %663 = vst.msk [vmem:[%s1176_s12 + $0x38] sm:$0xff] %vm362_vm1, %v1018_v58  ;;  %v647_v59 = vpop.f32.mrb[3].mxu1 }
 0x21f   : > { %662 = vst.msk [vmem:[%s1176_s12 + $0x30] sm:$0xff] %vm362_vm1, %v647_v59 }
 0x220 PF: > { %s17_s23 = sadd.s32 1, %s1088_s23   ;;  %s1269_s21 = smov %s1084_s22 }
 0x221   : > { %p14_p5 = scmp.ge.s32.totalorder %s17_s23, 4   ;;  %s1270_s22 = smov %s1272_s24 }
 0x223   :  { %16 = sbr.rel (!%p14_p5) target bundleno = 2 (0x2), region = 110 }

</bundles_post_ra>
